<compile_context>
chip_gen: v7x
topology: tpu7x:2x2x1
jax: 0.10.0
libtpu: 0.0.40
codegen_flags: <defaults>
</compile_context>

<pallas_src>
import functools

import jax
import jax.numpy as jnp
from jax.experimental import pallas as pl
from jax.experimental.pallas import tpu as pltpu


def _round_up(x: int, m: int) -> int:
    return ((x + m - 1) // m) * m


def _projector_kernel(x_ref, w_ref, b_ref, o_ref, *, compute_dtype):
    # x_ref: (tm, H) input dtype   w_ref: (H, P) bf16   b_ref: (1, P) f32
    # o_ref: (tm, P) out dtype
    x = x_ref[...].astype(compute_dtype)           # cast in-kernel (no extra HBM pass)
    acc = jnp.dot(x, w_ref[...], preferred_element_type=jnp.float32)
    o_ref[...] = (acc + b_ref[...]).astype(o_ref.dtype)


@functools.partial(jax.jit, static_argnames=("tm", "compute_dtype", "out_dtype"))
def paligemma_multimodal_projector(
    image_features,          # [B, N, H]  (any float dtype; cast to bf16 in-kernel)
    weight,                  # [H, P]  (transposed vs. torch's (P, H) Linear weight)
    bias,                    # [P]
    *,
    tm: int = 512,           # row tile; 512 keeps each step MXU-bound on v6e/v7x
    compute_dtype=jnp.bfloat16,
    out_dtype=None,          # default: match input dtype (torch semantics); pass
                             # jnp.bfloat16 when the downstream Gemma stack is bf16
):
    B, N, H = image_features.shape
    Hw, P = weight.shape
    assert H == Hw, "weight must be (vision_hidden, projection_dim)"
    if out_dtype is None:
        out_dtype = image_features.dtype

    M = B * N
    x2d = image_features.reshape(M, H)             # view-level reshape, no dtype pass

    # Weight/bias prep.  The weight should already be stored in bf16 at model
    # load; this cast is a no-op in that case (fallback only).
    w2d = weight if weight.dtype == compute_dtype else weight.astype(compute_dtype)
    b2d = bias.reshape(1, P).astype(jnp.float32)   # bias stays in accumulator dtype

    # Row tile: multiple of 16 (sublane packing for either f32 or bf16 x), capped
    # at the (rounded) problem size; Pallas handles a ragged last block, so no
    # explicit jnp.pad of x and no output slice are needed.
    tm_eff = min(tm, _round_up(M, 16))
    grid = (pl.cdiv(M, tm_eff),)

    x_bytes = jnp.dtype(x2d.dtype).itemsize
    out_bytes = jnp.dtype(out_dtype).itemsize
    cost = pl.CostEstimate(
        flops=2 * M * H * P,
        transcendentals=0,
        bytes_accessed=(
            M * H * x_bytes
            + H * P * jnp.dtype(compute_dtype).itemsize   # weight read exactly once
            + P * 4
            + M * P * out_bytes
        ),
    )

    out2d = pl.pallas_call(
        functools.partial(_projector_kernel, compute_dtype=compute_dtype),
        out_shape=jax.ShapeDtypeStruct((M, P), out_dtype),
        grid_spec=pltpu.PrefetchScalarGridSpec(
            num_scalar_prefetch=0,
            grid=grid,
            in_specs=[
                pl.BlockSpec((tm_eff, H), lambda i: (i, 0)),  # streamed activation rows
                pl.BlockSpec((H, P), lambda i: (0, 0)),       # VMEM-resident weight
                pl.BlockSpec((1, P), lambda i: (0, 0)),       # VMEM-resident f32 bias
            ],
            out_specs=pl.BlockSpec((tm_eff, P), lambda i: (i, 0)),
        ),
        compiler_params=pltpu.CompilerParams(
            dimension_semantics=("parallel",),                # v7x: shard row tiles on 2 TCs
            vmem_limit_bytes=48 * 1024 * 1024,                # > v5e 16 MiB default, < v7x 64 MiB
        ),
        cost_estimate=cost,
    )(x2d, w2d, b2d)

    return out2d.reshape(B, N, P)


if __name__ == "__main__":
    # Small synthetic config: vision_hidden=32, projection_dim=64, batch=2, num_patches=8
    B, N, H, P = 2, 8, 32, 64

    key = jax.random.PRNGKey(0)
    k_x, k_w, k_b = jax.random.split(key, 3)

    image_features = jax.random.normal(k_x, (B, N, H), dtype=jnp.float32)
    # torch Linear weight is (P, H); we store it transposed as (H, P) and cast it
    # to bf16 once here ("model load" time), so the kernel never re-casts it.
    weight = (jax.random.normal(k_w, (H, P), dtype=jnp.float32) / jnp.sqrt(H)).astype(jnp.bfloat16)
    bias = (jax.random.normal(k_b, (P,), dtype=jnp.float32) * 0.01)

    out = paligemma_multimodal_projector(image_features, weight, bias)
    out = jax.block_until_ready(out)
    assert out.shape == (B, N, P)
    assert out.dtype == image_features.dtype

    # Reference in plain JAX with the same bf16 operand rounding + f32 accumulation.
    x_ref = image_features.astype(jnp.bfloat16).astype(jnp.float32)
    w_ref = weight.astype(jnp.float32)
    ref = jnp.dot(x_ref.reshape(-1, H), w_ref,
                  precision=jax.lax.Precision.HIGHEST).reshape(B, N, P) + bias
    assert jnp.allclose(out, ref, atol=1e-3, rtol=1e-3), "mismatch vs. reference"

    print("KERNEL_OK")
</pallas_src>

<mosaic_0001>
module attributes {stable_mosaic.version = 11 : i64} {
  func.func @_projector_kernel(%arg0: i32, %arg1: memref<16x32xf32, #tpu.memory_space<vmem>>, %arg2: memref<32x64xbf16, #tpu.memory_space<vmem>>, %arg3: memref<1x64xf32, #tpu.memory_space<vmem>>, %arg4: memref<16x64xf32, #tpu.memory_space<vmem>>) attributes {dimension_semantics = [#tpu.dimension_semantics<parallel>], iteration_bounds = array<i64: 1>, scalar_prefetch = 0 : i64, scratch_operands = 0 : i64, tpu.core_type = #tpu.core_type<tc>, window_params = [{transform_indices = @transform_0, window_bounds = array<i64: 16, 32>}, {pipeline_mode = #tpu.pipeline_mode<synchronous>, transform_indices = @transform_1, window_bounds = array<i64: 32, 64>}, {pipeline_mode = #tpu.pipeline_mode<synchronous>, transform_indices = @transform_2, window_bounds = array<i64: 1, 64>}, {transform_indices = @transform_3, window_bounds = array<i64: 16, 64>}]} {
    %c0 = arith.constant 0 : index
    %c0_0 = arith.constant 0 : index
    %0 = vector.load %arg1[%c0, %c0_0] : memref<16x32xf32, #tpu.memory_space<vmem>>, vector<16x32xf32>
    %1 = arith.truncf %0 : vector<16x32xf32> to vector<16x32xbf16>
    %c0_1 = arith.constant 0 : index
    %c0_2 = arith.constant 0 : index
    %2 = vector.load %arg2[%c0_1, %c0_2] : memref<32x64xbf16, #tpu.memory_space<vmem>>, vector<32x64xbf16>
    %cst = arith.constant dense<0.000000e+00> : vector<16x64xf32>
    %3 = tpu.matmul %1, %2, %cst {dimension_numbers = #tpu.dot_dimension_numbers<[1], [0], [0], [1], [0, 0, 1, 1], [], []>} : vector<16x32xbf16>, vector<32x64xbf16>, vector<16x64xf32> -> vector<16x64xf32>
    %c0_3 = arith.constant 0 : index
    %c0_4 = arith.constant 0 : index
    %4 = vector.load %arg3[%c0_3, %c0_4] : memref<1x64xf32, #tpu.memory_space<vmem>>, vector<1x64xf32>
    %5 = vector.broadcast %4 : vector<1x64xf32> to vector<16x64xf32>
    %6 = arith.addf %3, %5 : vector<16x64xf32>
    %c0_5 = arith.constant 0 : index
    %c0_6 = arith.constant 0 : index
    %7 = vector.load %arg4[%c0_5, %c0_6] : memref<16x64xf32, #tpu.memory_space<vmem>>, vector<16x64xf32>
    tpu.vector_store %arg4[%c0_5, %c0_6], %6 {strides = array<i32>} : memref<16x64xf32, #tpu.memory_space<vmem>>, vector<16x64xf32>,
    return
  }
  func.func @transform_0(%arg0: i32) -> (i32, i32) {
    %c0_i32 = arith.constant 0 : i32
    %c0_i32_0 = arith.constant 0 : i32
    return %arg0, %c0_i32 : i32, i32
  }
  func.func @transform_1(%arg0: i32) -> (i32, i32) {
    %c0_i32 = arith.constant 0 : i32
    %c0_i32_0 = arith.constant 0 : i32
    %c0_i32_1 = arith.constant 0 : i32
    return %c0_i32, %c0_i32_0 : i32, i32
  }
  func.func @transform_2(%arg0: i32) -> (i32, i32) {
    %c0_i32 = arith.constant 0 : i32
    %c0_i32_0 = arith.constant 0 : i32
    %c0_i32_1 = arith.constant 0 : i32
    return %c0_i32, %c0_i32_0 : i32, i32
  }
  func.func @transform_3(%arg0: i32) -> (i32, i32) {
    %c0_i32 = arith.constant 0 : i32
    %c0_i32_0 = arith.constant 0 : i32
    return %arg0, %c0_i32 : i32, i32
  }
}

</mosaic_0001>

<bundles_post_ra>
// kernel: paligemma_multimodal_projector.1
= control target key start
LH: loop header
LB: loop body
LE: loop exit
PB: predicated region body
PF: predicated region fallthrough
CT: control target
= control target key end

     0   :  { %8 = vsyncpa [#allocation3], 0  ;;  %s308_s0 = inlined_call_operand.hbm [shape: f32[16,32], index: 0, kind: input, shape index: {}]   ;;  %s309_s1 = inlined_call_operand.hbm [shape: bf16[32,64], index: 1, kind: input, shape index: {}]   ;;  %s310_s2 = inlined_call_operand.vmem [shape: f32[1,64], index: 2, kind: input, shape index: {}]   ;;  %s311_s3 = inlined_call_operand.hbm [shape: f32[16,64], index: 3, kind: output, shape index: {}]  }
   0x1   :  { %9 = vsyncpa [#allocation6], 0 }
   0x2   :  { %10 = vsyncpa [#allocation4], 0  ;;  %s234_s12 = smov [#allocation2]   ;;  %s162_s16 = scalar_lea.hbm %s308_s0, 256 }
   0x3   :  { %s16_s13 = sshll.u32 %s234_s12, 4  ;;  %p163_p0 = scmp.ne.s32.totalorder %s308_s0, %s162_s16  ;;  %s17_s13 = int_to_ptr.vmem [resolvable:$true] %s16_s13 }
   0x4   :  { %p166_p1 = scmp.lt.u32.totalorder %s162_s16, %s308_s0 }
   0x6   :  { %p168_p2 = pnand %p166_p1, %p163_p0 }
   0x8   :  { %171 = shalt.err (!%p168_p2)
}
   0x9   :  { %s172_s21 = scalar_lea.vmem %s17_s13, 256  ;;  %p177_p4 = scmp.lt.s32.totalorder %s17_s13, %s17_s13 }
   0xa   :  { %p173_p3 = scmp.ne.s32.totalorder %s17_s13, %s172_s21  ;;  %p178_p5 = scmp.lt.s32.totalorder %s172_s21, %s172_s21 }
   0xc   :  { %p179_p6 = por %p178_p5, %p177_p4 }
   0xe   :  { %p180_p7 = pnand %p179_p6, %p173_p3 }
  0x10   :  { %183 = shalt.err (!%p180_p7)
}
  0x11   :  { %s235_s22 = smov 128   ;;  %s236_s23 = smov 8  }
  0x12   :  { %22 = dma.hbm_to_vmem [thread:$0]  %s308_s0, 256, %s17_s13, [#allocation3], %s235_s22, %s235_s22, %s236_s23  }
  0x13   :  { %s237_s26 = smov [#allocation5]   ;;  %s184_s30 = scalar_lea.hbm %s309_s1, 256 }
  0x14   :  { %s28_s27 = sshll.u32 %s237_s26, 4  ;;  %p185_p8 = scmp.ne.s32.totalorder %s309_s1, %s184_s30  ;;  %s29_s27 = int_to_ptr.vmem [resolvable:$true] %s28_s27 }
  0x15   :  { %p188_p9 = scmp.lt.u32.totalorder %s184_s30, %s309_s1 }
  0x17   :  { %p190_p10 = pnand %p188_p9, %p185_p8 }
  0x19   :  { %193 = shalt.err (!%p190_p10)
}
  0x1a   :  { %s194_s8 = scalar_lea.vmem %s29_s27, 256  ;;  %p199_p12 = scmp.lt.s32.totalorder %s29_s27, %s29_s27 }
  0x1b   :  { %p195_p11 = scmp.ne.s32.totalorder %s29_s27, %s194_s8  ;;  %p200_p13 = scmp.lt.s32.totalorder %s194_s8, %s194_s8 }
  0x1d   :  { %p201_p0 = por %p200_p13, %p199_p12 }
  0x1f   :  { %p202_p1 = pnand %p201_p0, %p195_p11 }
  0x21   :  { %205 = shalt.err (!%p202_p1)
}
  0x22   :  { %s238_s0 = smov 64   ;;  %s239_s9 = smov 4  }
  0x23   :  { %34 = dma.hbm_to_vmem [thread:$0]  %s309_s1, 256, %s29_s27, [#allocation6], %s238_s0, %s238_s0, %s239_s9  }
  0x24   :  { %228 = dma.done.wait [#allocation3], 256  }
  0x25   :  { %229 = vsyncadd [#allocation3], 4294967040 }
  0x26   :  { %230 = dma.done.wait [#allocation6], 256  }
  0x27   :  { %231 = vsyncadd [#allocation6], 4294967040  ;;  %v240_v0 = vmov 0.0   ;;  %vm241_vm0 = vmmov 0   ;;  %v160_v1 = vld [vmem:[#allocation5] sm:$0xff]   ;;  %v161_v2 = vld [vmem:[#allocation5 + $0x8] sm:$0xff]  }
  0x28   :  { %143 = vmatprep.subr.bf16.mxu0 %v240_v0  ;;  %147 = vmatprep.mubr.msk.bf16.mxu0 %vm241_vm0, %v240_v0  ;;  %v44_v3 = vld [vmem:[#allocation2] sm:$0xff]  ;;  %v45_v4 = vld [vmem:[#allocation2 + $0x8] sm:$0xff]  ;;  %vm70_vm1 = vcmask 261120   ;;  %vm115_vm2 = vcmask 523264   ;;  %s242_s13 = smov [#allocation7]  }
  0x29   :  { %144 = vmatpush3.bf16.msra.mxu0 %v160_v1  ;;  %v46_v5 = vpack.c.bf16 %v45_v4, %v44_v3  ;;  %v136_v6 = vld [vmem:[%s310_s2] ss:$0 sm:$0xff]  ;;  %s123_s14 = sshll.u32 %s242_s13, 4  ;;  %s124_s14 = int_to_ptr.vmem [resolvable:$true] %s123_s14 }
  0x2a   :  { %145 = vmatprep.subr.bf16.mxu0 %v240_v0  ;;  %s206_s15 = scalar_lea.vmem %s124_s14, 256  ;;  %p211_p3 = scmp.lt.s32.totalorder %s124_s14, %s124_s14 }
  0x2b   :  { %p207_p2 = scmp.ne.s32.totalorder %s124_s14, %s206_s15  ;;  %p212_p4 = scmp.lt.s32.totalorder %s206_s15, %s206_s15 }
  0x2d   :  { %146 = vmatpush3.bf16.msra.mxu0 %v161_v2  ;;  %p213_p5 = por %p212_p4, %p211_p3 }
  0x2f   :  { %p214_p6 = pnand %p213_p5, %p207_p2 }
  0x30   :  { %148 = vmatmul.mubr.msk.bf16.vlgmr.msra.gmra.mrb[0].mxu0 %vm70_vm1, %v46_v5 }
 0x103   :  { %v108_v7 = vpop.f32.mrb[0].mxu0 }
 0x104   :  { %v109_v8 = vadd.f32 %v136_v6, %v108_v7  ;;  %v149_v9 = vpop.f32.mrb[1].mxu0 }
 0x105   :  { %v111_v10 = vpop.f32.mrb[2].mxu0 }
 0x106   :  { %v112_v11 = vadd.f32 %v136_v6, %v111_v10  ;;  %v150_v12 = vpop.f32.mrb[3].mxu0  ;;  %116 = vst.msk [vmem:[#allocation7] sm:$0xff] %vm115_vm2, %v109_v8 }
 0x108   :  { %117 = vst.msk [vmem:[#allocation7 + $0x8] sm:$0xff] %vm115_vm2, %v112_v11 }
 0x109   :  { %217 = shalt.err (!%p214_p6)
}
 0x10a   :  { %s218_s17 = scalar_lea.hbm %s311_s3, 256 }
 0x10b   :  { %p219_p7 = scmp.ne.s32.totalorder %s311_s3, %s218_s17  ;;  %p222_p8 = scmp.lt.u32.totalorder %s218_s17, %s311_s3 }
 0x10d   :  { %p224_p9 = pnand %p222_p8, %p219_p7 }
 0x10f   :  { %227 = shalt.err (!%p224_p9)
}
 0x110   :  { %129 = dma.vmem_to_hbm [thread:$0]  %s124_s14, 256, %s311_s3, [#allocation4], %s235_s22, %s235_s22, %s236_s23  }
 0x111   :  { %232 = dma.done.wait [#allocation4], 256  }
 0x112   :  { %233 = vsyncadd [#allocation4], 4294967040 }
 0x113   :  { %133 = vsyncpa [#allocation3], 1 }
 0x114   :  { %134 = vsyncpa [#allocation6], 1 }
 0x115   :  { %135 = vsyncpa [#allocation4], 1 }

</bundles_post_ra>
